<compile_context>
chip_gen: v7x
topology: tpu7x:2x2x1
jax: 0.10.0
libtpu: 0.0.40
codegen_flags: <defaults>
</compile_context>

<pallas_src>
import functools

import jax
import jax.numpy as jnp
from jax.experimental import pallas as pl
from jax.experimental.pallas import tpu as pltpu

_LANE = 128
_BATCH_ALIGN = 16  # bf16 packs 16 rows per sublane group


def _round_up(n, m):
    return ((n + m - 1) // m) * m


def _cdiv(a, b):
    return (a + b - 1) // b


def _mlp_kernel(n_layers, out_pads, x_ref, *refs):
    """Fused MLP forward for one batch tile.

    refs = (W_0, ..., W_{n_layers-1}, bias_pack, out)
    Linear bias + eval-mode BatchNorm are pre-folded into (W_j, b_j), so each
    hidden layer is dot + bias + ReLU; the head layer skips the ReLU.
    """
    w_refs = refs[:n_layers]
    b_pack_ref = refs[n_layers]
    out_ref = refs[n_layers + 1]

    h = x_ref[...]                                   # bf16, consumed natively
    for j in range(n_layers):
        w = w_refs[j][...]                           # (k, n_pad) bf16, resident
        b = b_pack_ref[j][:, :out_pads[j]]           # (1, n_pad) f32
        y = jnp.dot(h, w, preferred_element_type=jnp.float32) + b
        if j < n_layers - 1:
            h = jnp.maximum(y, 0.0).astype(w_refs[j + 1].dtype)
        else:
            h = y
    out_ref[...] = h.astype(out_ref.dtype)           # bf16 lane-dense store


def fold_and_pad_params(params, input_dim, weight_dtype=jnp.bfloat16):
    """Fold Linear bias + eval BN into (W', b'); zero-pad OUTPUT dims to 128.

    The first layer's K dim stays at input_dim (no 128 pad): the x block uses
    the full feature dim, which is always a legal block shape.

    params: [(W, b, scale, shift)] * n_hidden + [(Wo, bo)], W as (in, out).
    Returns (weights[bf16], biases[f32 (1, n_pad)], out_pads).
    """
    weights, biases, out_pads = [], [], []
    k_dim = input_dim
    n_total = len(params)
    for li, layer in enumerate(params):
        if li < n_total - 1:
            w, b, scale, shift = layer
            w_f = w * scale                 # fold BN scale into weight columns
            b_f = b * scale + shift         # fold bias + BN shift
        else:
            w_f, b_f = layer                # classification head
        k_true, n_true = w_f.shape
        n_pad = _round_up(n_true, _LANE)
        wp = jnp.zeros((k_dim, n_pad), jnp.float32).at[:k_true, :n_true].set(w_f)
        bp = jnp.zeros((1, n_pad), jnp.float32).at[:, :n_true].set(b_f)
        weights.append(wp.astype(weight_dtype))
        biases.append(bp)
        out_pads.append(n_pad)
        k_dim = n_pad
    return weights, biases, out_pads


def prepare_humor_mlp(params, input_dim, weight_dtype=jnp.bfloat16):
    """One-time (per model) fold/pad/cast + bias packing. Hoisted out of the
    per-call forward so no pad/cast XLA ops run on the hot path."""
    weights, biases, out_pads = fold_and_pad_params(params, input_dim,
                                                    weight_dtype)
    n_layers = len(weights)
    max_np = max(out_pads)
    bias_pack = jnp.zeros((n_layers, 1, max_np), jnp.float32)
    for j, b in enumerate(biases):
        bias_pack = bias_pack.at[j, :, :b.shape[1]].set(b)
    return {
        "weights": tuple(jax.block_until_ready(w) for w in weights),
        "bias_pack": jax.block_until_ready(bias_pack),
        "out_pads": tuple(out_pads),
        "input_dim": int(input_dim),
    }


def humor_mlp_forward(x, prepared, num_classes, *, max_batch_tile=2048,
                      activation_dtype=jnp.bfloat16):
    """Eval-mode HumorMLP forward. `prepared` comes from prepare_humor_mlp()."""
    weights = prepared["weights"]
    bias_pack = prepared["bias_pack"]
    out_pads = prepared["out_pads"]
    input_dim = prepared["input_dim"]
    batch, x_dim = x.shape
    assert x_dim == input_dim
    n_layers = len(weights)

    # Balanced batch tiling: no remainder blow-up, >=2 tiles when the batch is
    # big enough (keeps v7x's second TensorCore busy), 16-row aligned for bf16.
    n_tiles = _cdiv(batch, max_batch_tile)
    if batch >= 2 * _BATCH_ALIGN:
        n_tiles = max(n_tiles, 2)
    tb = _round_up(_cdiv(batch, n_tiles), _BATCH_ALIGN)
    pb = _round_up(batch, tb)

    xb = x.astype(activation_dtype)
    if pb != batch:
        xb = jnp.pad(xb, ((0, pb - batch), (0, 0)))

    kernel = functools.partial(_mlp_kernel, n_layers, out_pads)

    # x tiles stream per grid step; weights & bias pack stay VMEM-resident.
    in_specs = [pl.BlockSpec((tb, input_dim), lambda i: (i, 0))]
    in_specs += [pl.BlockSpec(w.shape, lambda i: (0, 0)) for w in weights]
    in_specs += [pl.BlockSpec(bias_pack.shape, lambda i: (0, 0, 0))]

    # Scoped-VMEM hint: 2x double-buffered bf16 in/out tiles + resident
    # weights/biases (+ headroom).  Matters on v5e (16 MiB scoped default).
    est = (2 * tb * input_dim * 2 + 2 * tb * out_pads[-1] * 2
           + sum(int(w.size) * 2 for w in weights) + int(bias_pack.size) * 4)
    vmem_limit = int(min(max(2 * est + (8 << 20), 16 << 20), 48 << 20))

    out = pl.pallas_call(
        kernel,
        out_shape=jax.ShapeDtypeStruct((pb, out_pads[-1]), jnp.bfloat16),
        grid=(pb // tb,),
        in_specs=in_specs,
        out_specs=pl.BlockSpec((tb, out_pads[-1]), lambda i: (i, 0)),
        compiler_params=pltpu.CompilerParams(
            dimension_semantics=("parallel",),
            vmem_limit_bytes=vmem_limit),
    )(xb, *weights, bias_pack)

    # Lane-dense padded bf16 output; slice to true classes + upcast (free).
    return out[:batch, :num_classes].astype(jnp.float32)


def init_params(key, input_dim, hidden_dims, num_classes, eps=1e-5):
    """Deterministic parameter init matching HumorMLP's layer shapes."""
    params = []
    prev = input_dim
    for h in hidden_dims:
        key, k_w, k_b, k_g, k_be, k_m, k_v = jax.random.split(key, 7)
        # Linear (stored as (in, out) = transposed PyTorch layout)
        w = jax.random.normal(k_w, (prev, h), jnp.float32) * 0.05
        b = jax.random.normal(k_b, (1, h), jnp.float32) * 0.05
        # BatchNorm1d parameters / running stats (eval mode)
        gamma = 1.0 + 0.1 * jax.random.normal(k_g, (1, h), jnp.float32)
        beta = 0.1 * jax.random.normal(k_be, (1, h), jnp.float32)
        run_mean = 0.1 * jax.random.normal(k_m, (1, h), jnp.float32)
        run_var = 1.0 + 0.1 * jax.random.uniform(k_v, (1, h), jnp.float32)
        scale = gamma / jnp.sqrt(run_var + eps)
        shift = beta - run_mean * scale
        params.append((w, b, scale, shift))
        prev = h
    key, k_wo, k_bo = jax.random.split(key, 3)
    wo = jax.random.normal(k_wo, (prev, num_classes), jnp.float32) * 0.05
    bo = jax.random.normal(k_bo, (1, num_classes), jnp.float32) * 0.05
    params.append((wo, bo))
    return params


def reference_forward(x, params):
    """Pure-JAX f32 reference of the original eval-mode module math."""
    h = x
    for w, b, scale, shift in params[:-1]:
        h = jnp.maximum((h @ w + b) * scale + shift, 0.0)
    wo, bo = params[-1]
    return h @ wo + bo


def reference_forward_folded(x, params, num_classes,
                             weight_dtype=jnp.bfloat16):
    """Pure-JAX reference of the exact folded / padded / bf16 kernel math."""
    batch, input_dim = x.shape
    weights, biases, _ = fold_and_pad_params(params, input_dim, weight_dtype)
    h = x.astype(weight_dtype)
    for j, (w, b) in enumerate(zip(weights, biases)):
        y = jnp.dot(h, w, preferred_element_type=jnp.float32) + b
        if j < len(weights) - 1:
            h = jnp.maximum(y, 0.0).astype(weight_dtype)
        else:
            h = y
    return h.astype(jnp.bfloat16).astype(jnp.float32)[:, :num_classes]


if __name__ == "__main__":
    # Small shapes consistent with the module's forward:
    batch = 8
    input_dim = 32
    hidden_dims = [64, 32, 32]
    num_classes = 5

    key = jax.random.PRNGKey(0)
    key, kx = jax.random.split(key)
    x = jax.random.normal(kx, (batch, input_dim), jnp.float32)
    params = init_params(key, input_dim, hidden_dims, num_classes)

    # Fold/pad/pack once (per model), then run the fused kernel.
    prepared = prepare_humor_mlp(params, input_dim)
    out = humor_mlp_forward(x, prepared, num_classes)
    out = jax.block_until_ready(out)
    assert out.shape == (batch, num_classes)

    # Check vs pure-JAX run of the identical folded / bf16 math.
    ref_folded = reference_forward_folded(x, params, num_classes)
    assert jnp.allclose(out, ref_folded, atol=1e-2, rtol=1e-2), \
        "mismatch vs folded reference"

    # Looser check vs the original full-f32 eval-mode semantics.
    ref_f32 = reference_forward(x, params)
    assert jnp.allclose(out, ref_f32, atol=5e-2, rtol=5e-2), \
        "mismatch vs f32 reference"

    print("KERNEL_OK")
</pallas_src>

<mosaic_0001>
module attributes {stable_mosaic.version = 11 : i64} {
  func.func @_mlp_kernel(%arg0: i32, %arg1: memref<16x32xbf16, #tpu.memory_space<vmem>>, %arg2: memref<32x128xbf16, #tpu.memory_space<vmem>>, %arg3: memref<128x128xbf16, #tpu.memory_space<vmem>>, %arg4: memref<128x128xbf16, #tpu.memory_space<vmem>>, %arg5: memref<128x128xbf16, #tpu.memory_space<vmem>>, %arg6: memref<4x1x128xf32, #tpu.memory_space<vmem>>, %arg7: memref<16x128xbf16, #tpu.memory_space<vmem>>) attributes {dimension_semantics = [#tpu.dimension_semantics<parallel>], iteration_bounds = array<i64: 1>, scalar_prefetch = 0 : i64, scratch_operands = 0 : i64, tpu.core_type = #tpu.core_type<tc>, window_params = [{transform_indices = @transform_0, window_bounds = array<i64: 16, 32>}, {pipeline_mode = #tpu.pipeline_mode<synchronous>, transform_indices = @transform_1, window_bounds = array<i64: 32, 128>}, {pipeline_mode = #tpu.pipeline_mode<synchronous>, transform_indices = @transform_2, window_bounds = array<i64: 128, 128>}, {pipeline_mode = #tpu.pipeline_mode<synchronous>, transform_indices = @transform_3, window_bounds = array<i64: 128, 128>}, {pipeline_mode = #tpu.pipeline_mode<synchronous>, transform_indices = @transform_4, window_bounds = array<i64: 128, 128>}, {pipeline_mode = #tpu.pipeline_mode<synchronous>, transform_indices = @transform_5, window_bounds = array<i64: 4, 1, 128>}, {transform_indices = @transform_6, window_bounds = array<i64: 16, 128>}]} {
    %c0 = arith.constant 0 : index
    %c0_0 = arith.constant 0 : index
    %0 = vector.load %arg1[%c0, %c0_0] : memref<16x32xbf16, #tpu.memory_space<vmem>>, vector<16x32xbf16>
    %c0_1 = arith.constant 0 : index
    %c0_2 = arith.constant 0 : index
    %1 = vector.load %arg2[%c0_1, %c0_2] : memref<32x128xbf16, #tpu.memory_space<vmem>>, vector<32x128xbf16>
    %c0_3 = arith.constant 0 : index
    %c0_4 = arith.constant 0 : index
    %c0_5 = arith.constant 0 : index
    %2 = vector.load %arg6[%c0_3, %c0_4, %c0_5] : memref<4x1x128xf32, #tpu.memory_space<vmem>>, vector<1x1x128xf32>
    %3 = vector.shape_cast %2 : vector<1x1x128xf32> to vector<1x128xf32>
    %cst = arith.constant dense<0.000000e+00> : vector<16x128xf32>
    %4 = tpu.matmul %0, %1, %cst {dimension_numbers = #tpu.dot_dimension_numbers<[1], [0], [0], [1], [0, 0, 1, 1], [], []>} : vector<16x32xbf16>, vector<32x128xbf16>, vector<16x128xf32> -> vector<16x128xf32>
    %5 = vector.broadcast %3 : vector<1x128xf32> to vector<16x128xf32>
    %6 = arith.addf %4, %5 : vector<16x128xf32>
    %cst_6 = arith.constant 0.000000e+00 : f32
    %7 = vector.broadcast %cst_6 : f32 to vector<16x128xf32>
    %8 = arith.maximumf %6, %7 : vector<16x128xf32>
    %9 = arith.truncf %8 : vector<16x128xf32> to vector<16x128xbf16>
    %c0_7 = arith.constant 0 : index
    %c0_8 = arith.constant 0 : index
    %10 = vector.load %arg3[%c0_7, %c0_8] : memref<128x128xbf16, #tpu.memory_space<vmem>>, vector<128x128xbf16>
    %c1 = arith.constant 1 : index
    %c0_9 = arith.constant 0 : index
    %c0_10 = arith.constant 0 : index
    %11 = vector.load %arg6[%c1, %c0_9, %c0_10] : memref<4x1x128xf32, #tpu.memory_space<vmem>>, vector<1x1x128xf32>
    %12 = vector.shape_cast %11 : vector<1x1x128xf32> to vector<1x128xf32>
    %cst_11 = arith.constant dense<0.000000e+00> : vector<16x128xf32>
    %13 = tpu.matmul %9, %10, %cst_11 {dimension_numbers = #tpu.dot_dimension_numbers<[1], [0], [0], [1], [0, 0, 1, 1], [], []>} : vector<16x128xbf16>, vector<128x128xbf16>, vector<16x128xf32> -> vector<16x128xf32>
    %14 = vector.broadcast %12 : vector<1x128xf32> to vector<16x128xf32>
    %15 = arith.addf %13, %14 : vector<16x128xf32>
    %cst_12 = arith.constant 0.000000e+00 : f32
    %16 = vector.broadcast %cst_12 : f32 to vector<16x128xf32>
    %17 = arith.maximumf %15, %16 : vector<16x128xf32>
    %18 = arith.truncf %17 : vector<16x128xf32> to vector<16x128xbf16>
    %c0_13 = arith.constant 0 : index
    %c0_14 = arith.constant 0 : index
    %19 = vector.load %arg4[%c0_13, %c0_14] : memref<128x128xbf16, #tpu.memory_space<vmem>>, vector<128x128xbf16>
    %c2 = arith.constant 2 : index
    %c0_15 = arith.constant 0 : index
    %c0_16 = arith.constant 0 : index
    %20 = vector.load %arg6[%c2, %c0_15, %c0_16] : memref<4x1x128xf32, #tpu.memory_space<vmem>>, vector<1x1x128xf32>
    %21 = vector.shape_cast %20 : vector<1x1x128xf32> to vector<1x128xf32>
    %cst_17 = arith.constant dense<0.000000e+00> : vector<16x128xf32>
    %22 = tpu.matmul %18, %19, %cst_17 {dimension_numbers = #tpu.dot_dimension_numbers<[1], [0], [0], [1], [0, 0, 1, 1], [], []>} : vector<16x128xbf16>, vector<128x128xbf16>, vector<16x128xf32> -> vector<16x128xf32>
    %23 = vector.broadcast %21 : vector<1x128xf32> to vector<16x128xf32>
    %24 = arith.addf %22, %23 : vector<16x128xf32>
    %cst_18 = arith.constant 0.000000e+00 : f32
    %25 = vector.broadcast %cst_18 : f32 to vector<16x128xf32>
    %26 = arith.maximumf %24, %25 : vector<16x128xf32>
    %27 = arith.truncf %26 : vector<16x128xf32> to vector<16x128xbf16>
    %c0_19 = arith.constant 0 : index
    %c0_20 = arith.constant 0 : index
    %28 = vector.load %arg5[%c0_19, %c0_20] : memref<128x128xbf16, #tpu.memory_space<vmem>>, vector<128x128xbf16>
    %c3 = arith.constant 3 : index
    %c0_21 = arith.constant 0 : index
    %c0_22 = arith.constant 0 : index
    %29 = vector.load %arg6[%c3, %c0_21, %c0_22] : memref<4x1x128xf32, #tpu.memory_space<vmem>>, vector<1x1x128xf32>
    %30 = vector.shape_cast %29 : vector<1x1x128xf32> to vector<1x128xf32>
    %cst_23 = arith.constant dense<0.000000e+00> : vector<16x128xf32>
    %31 = tpu.matmul %27, %28, %cst_23 {dimension_numbers = #tpu.dot_dimension_numbers<[1], [0], [0], [1], [0, 0, 1, 1], [], []>} : vector<16x128xbf16>, vector<128x128xbf16>, vector<16x128xf32> -> vector<16x128xf32>
    %32 = vector.broadcast %30 : vector<1x128xf32> to vector<16x128xf32>
    %33 = arith.addf %31, %32 : vector<16x128xf32>
    %34 = arith.truncf %33 : vector<16x128xf32> to vector<16x128xbf16>
    %c0_24 = arith.constant 0 : index
    %c0_25 = arith.constant 0 : index
    %35 = vector.load %arg7[%c0_24, %c0_25] : memref<16x128xbf16, #tpu.memory_space<vmem>>, vector<16x128xbf16>
    tpu.vector_store %arg7[%c0_24, %c0_25], %34 {strides = array<i32>} : memref<16x128xbf16, #tpu.memory_space<vmem>>, vector<16x128xbf16>,
    return
  }
  func.func @transform_0(%arg0: i32) -> (i32, i32) {
    %c0_i32 = arith.constant 0 : i32
    %c0_i32_0 = arith.constant 0 : i32
    return %arg0, %c0_i32 : i32, i32
  }
  func.func @transform_1(%arg0: i32) -> (i32, i32) {
    %c0_i32 = arith.constant 0 : i32
    %c0_i32_0 = arith.constant 0 : i32
    %c0_i32_1 = arith.constant 0 : i32
    return %c0_i32, %c0_i32_0 : i32, i32
  }
  func.func @transform_2(%arg0: i32) -> (i32, i32) {
    %c0_i32 = arith.constant 0 : i32
    %c0_i32_0 = arith.constant 0 : i32
    %c0_i32_1 = arith.constant 0 : i32
    return %c0_i32, %c0_i32_0 : i32, i32
  }
  func.func @transform_3(%arg0: i32) -> (i32, i32) {
    %c0_i32 = arith.constant 0 : i32
    %c0_i32_0 = arith.constant 0 : i32
    %c0_i32_1 = arith.constant 0 : i32
    return %c0_i32, %c0_i32_0 : i32, i32
  }
  func.func @transform_4(%arg0: i32) -> (i32, i32) {
    %c0_i32 = arith.constant 0 : i32
    %c0_i32_0 = arith.constant 0 : i32
    %c0_i32_1 = arith.constant 0 : i32
    return %c0_i32, %c0_i32_0 : i32, i32
  }
  func.func @transform_5(%arg0: i32) -> (i32, i32, i32) {
    %c0_i32 = arith.constant 0 : i32
    %c0_i32_0 = arith.constant 0 : i32
    %c0_i32_1 = arith.constant 0 : i32
    %c0_i32_2 = arith.constant 0 : i32
    return %c0_i32, %c0_i32_0, %c0_i32_1 : i32, i32, i32
  }
  func.func @transform_6(%arg0: i32) -> (i32, i32) {
    %c0_i32 = arith.constant 0 : i32
    %c0_i32_0 = arith.constant 0 : i32
    return %arg0, %c0_i32 : i32, i32
  }
}

</mosaic_0001>

<bundles_post_ra>
// kernel: tpu_custom_call.1
= control target key start
LH: loop header
LB: loop body
LE: loop exit
PB: predicated region body
PF: predicated region fallthrough
CT: control target
= control target key end

     0   :  { %11 = vsyncpa [#allocation3], 0  ;;  %s1059_s0 = inlined_call_operand.hbm [shape: bf16[16,32], index: 0, kind: input, shape index: {}]   ;;  %s1060_s1 = inlined_call_operand.hbm [shape: bf16[32,128], index: 1, kind: input, shape index: {}]   ;;  %s1061_s2 = inlined_call_operand.hbm [shape: bf16[128,128], index: 2, kind: input, shape index: {}]   ;;  %s1062_s3 = inlined_call_operand.hbm [shape: bf16[128,128], index: 3, kind: input, shape index: {}]   ;;  %s1063_s4 = inlined_call_operand.hbm [shape: bf16[128,128], index: 4, kind: input, shape index: {}]   ;;  %s1064_s5 = inlined_call_operand.vmem [shape: f32[4,1,128], index: 5, kind: input, shape index: {}]   ;;  %s1065_s6 = inlined_call_operand.hbm [shape: bf16[16,128], index: 6, kind: output, shape index: {}]  }
   0x1   :  { %12 = vsyncpa [#allocation6], 0 }
   0x2   :  { %13 = vsyncpa [#allocation9], 0 }
   0x3   :  { %14 = vsyncpa [#allocation4], 0  ;;  %s864_s21 = smov [#allocation5]   ;;  %s865_s23 = smov [#allocation8]  }
   0x4   :  { %s32_s22 = sshll.u32 %s864_s21, 4  ;;  %s56_s24 = sshll.u32 %s865_s23, 4  ;;  %s33_s22 = int_to_ptr.vmem [resolvable:$true] %s32_s22  ;;  %s909_s24 = int_to_ptr.vmem [resolvable:$true] %s56_s24 }
   0x5   :  { %s724_s27 = scalar_lea.hbm %s1060_s1, 256 }
   0x6   :  { %p725_p0 = scmp.ne.s32.totalorder %s1060_s1, %s724_s27  ;;  %p728_p1 = scmp.lt.u32.totalorder %s724_s27, %s1060_s1 }
   0x8   :  { %p730_p2 = pnand %p728_p1, %p725_p0 }
   0xa   :  { %733 = shalt.err (!%p730_p2)
}
   0xb   :  { %s734_s8 = scalar_lea.vmem %s33_s22, 256  ;;  %p739_p4 = scmp.lt.s32.totalorder %s33_s22, %s33_s22 }
   0xc   :  { %p735_p3 = scmp.ne.s32.totalorder %s33_s22, %s734_s8  ;;  %p740_p5 = scmp.lt.s32.totalorder %s734_s8, %s734_s8 }
   0xe   :  { %p741_p6 = por %p740_p5, %p739_p4 }
  0x10   :  { %p742_p7 = pnand %p741_p6, %p735_p3 }
  0x12   :  { %745 = shalt.err (!%p742_p7)
}
  0x13   :  { %s866_s9 = smov 64   ;;  %s867_s10 = smov 4  }
  0x14   :  { %38 = dma.hbm_to_vmem [thread:$0]  %s1060_s1, 256, %s33_s22, [#allocation6], %s866_s9, %s866_s9, %s867_s10  }
  0x15   :  { %s746_s15 = scalar_lea.hbm %s1062_s3, 1024 }
  0x16   :  { %p747_p8 = scmp.ne.s32.totalorder %s1062_s3, %s746_s15  ;;  %p750_p9 = scmp.lt.u32.totalorder %s746_s15, %s1062_s3 }
  0x18   :  { %p752_p10 = pnand %p750_p9, %p747_p8 }
  0x1a   :  { %755 = shalt.err (!%p752_p10)
}
  0x1b   :  { %s756_s20 = scalar_lea.vmem %s909_s24, 1024  ;;  %p761_p12 = scmp.lt.s32.totalorder %s909_s24, %s909_s24 }
  0x1c   :  { %p757_p11 = scmp.ne.s32.totalorder %s909_s24, %s756_s20  ;;  %p762_p13 = scmp.lt.s32.totalorder %s756_s20, %s756_s20 }
  0x1e   :  { %p763_p0 = por %p762_p13, %p761_p12 }
  0x20   :  { %p764_p1 = pnand %p763_p0, %p757_p11 }
  0x22   :  { %767 = shalt.err (!%p764_p1)
}
  0x23   :  { %62 = dma.hbm_to_vmem [thread:$0]  %s1062_s3, 1024, %s909_s24, [#allocation9], %s866_s9, %s866_s9, %s867_s10  }
  0x24   :  { %s868_s22 = smov [#allocation2]   ;;  %s869_s25 = smov [#allocation7]  }
  0x25   :  { %s20_s23 = sshll.u32 %s868_s22, 4  ;;  %s44_s26 = sshll.u32 %s869_s25, 4  ;;  %s21_s23 = int_to_ptr.vmem [resolvable:$true] %s20_s23  ;;  %s946_s26 = int_to_ptr.vmem [resolvable:$true] %s44_s26 }
  0x26   :  { %s768_s29 = scalar_lea.hbm %s1059_s0, 128 }
  0x27   :  { %p769_p2 = scmp.ne.s32.totalorder %s1059_s0, %s768_s29  ;;  %p772_p3 = scmp.lt.u32.totalorder %s768_s29, %s1059_s0 }
  0x29   :  { %p774_p4 = pnand %p772_p3, %p769_p2 }
  0x2b   :  { %777 = shalt.err (!%p774_p4)
}
  0x2c   :  { %s778_s3 = scalar_lea.vmem %s21_s23, 128  ;;  %p783_p6 = scmp.lt.s32.totalorder %s21_s23, %s21_s23 }
  0x2d   :  { %p779_p5 = scmp.ne.s32.totalorder %s21_s23, %s778_s3  ;;  %p784_p7 = scmp.lt.s32.totalorder %s778_s3, %s778_s3 }
  0x2f   :  { %p785_p8 = por %p784_p7, %p783_p6 }
  0x31   :  { %p786_p9 = pnand %p785_p8, %p779_p5 }
  0x33   :  { %789 = shalt.err (!%p786_p9)
}
  0x34   :  { %26 = dma.hbm_to_vmem [thread:$0]  %s1059_s0, 128, %s21_s23, [#allocation3], %s866_s9, %s866_s9, %s867_s10  }
  0x35   :  { %s790_s15 = scalar_lea.hbm %s1061_s2, 1024 }
  0x36   :  { %p791_p10 = scmp.ne.s32.totalorder %s1061_s2, %s790_s15  ;;  %p794_p11 = scmp.lt.u32.totalorder %s790_s15, %s1061_s2 }
  0x38   :  { %p796_p12 = pnand %p794_p11, %p791_p10 }
  0x3a   :  { %799 = shalt.err (!%p796_p12)
}
  0x3b   :  { %s800_s20 = scalar_lea.vmem %s946_s26, 1024  ;;  %p805_p0 = scmp.lt.s32.totalorder %s946_s26, %s946_s26 }
  0x3c   :  { %p801_p13 = scmp.ne.s32.totalorder %s946_s26, %s800_s20  ;;  %p806_p1 = scmp.lt.s32.totalorder %s800_s20, %s800_s20 }
  0x3e   :  { %p807_p2 = por %p806_p1, %p805_p0 }
  0x40   :  { %p808_p3 = pnand %p807_p2, %p801_p13 }
  0x42   :  { %811 = shalt.err (!%p808_p3)
}
  0x43   :  { %50 = dma.hbm_to_vmem [thread:$0]  %s1061_s2, 1024, %s946_s26, [#allocation6], %s866_s9, %s866_s9, %s867_s10  }
  0x44   :  { %s870_s21 = smov [#allocation10]   ;;  %s812_s27 = scalar_lea.hbm %s1063_s4, 1024 }
  0x45   :  { %s68_s22 = sshll.u32 %s870_s21, 4  ;;  %p813_p4 = scmp.ne.s32.totalorder %s1063_s4, %s812_s27  ;;  %s69_s22 = int_to_ptr.vmem [resolvable:$true] %s68_s22 }
  0x46   :  { %p816_p5 = scmp.lt.u32.totalorder %s812_s27, %s1063_s4 }
  0x48   :  { %p818_p6 = pnand %p816_p5, %p813_p4 }
  0x4a   :  { %821 = shalt.err (!%p818_p6)
}
  0x4b   :  { %s822_s8 = scalar_lea.vmem %s69_s22, 1024  ;;  %p827_p8 = scmp.lt.s32.totalorder %s69_s22, %s69_s22 }
  0x4c   :  { %p823_p7 = scmp.ne.s32.totalorder %s69_s22, %s822_s8  ;;  %p828_p9 = scmp.lt.s32.totalorder %s822_s8, %s822_s8 }
  0x4e   :  { %p829_p10 = por %p828_p9, %p827_p8 }
  0x50   :  { %p830_p11 = pnand %p829_p10, %p823_p7 }
  0x52   :  { %833 = shalt.err (!%p830_p11)
}
  0x53   :  { %74 = dma.hbm_to_vmem [thread:$0]  %s1063_s4, 1024, %s69_s22, [#allocation9], %s866_s9, %s866_s9, %s867_s10  }
  0x54   :  { %856 = dma.done.wait [#allocation3], 128  }
  0x55   :  { %857 = vsyncadd [#allocation3], 4294967168 }
  0x56   :  { %858 = dma.done.wait [#allocation6], 1280  }
  0x57   :  { %859 = vsyncadd [#allocation6], 4294966016 }
  0x58   :  { %860 = dma.done.wait [#allocation9], 2048  }
  0x59   :  { %861 = vsyncadd [#allocation9], 4294965248  ;;  %v871_v0 = vmov 0.0   ;;  %vm872_vm0 = vmmov 0   ;;  %v697_v1 = vld [vmem:[#allocation5] sm:$0xff]   ;;  %v698_v2 = vld [vmem:[#allocation5 + $0x8] sm:$0xff]  }
  0x5a   :  { %619 = vmatprep.subr.bf16.mxu0 %v871_v0  ;;  %623 = vmatprep.mubr.msk.bf16.mxu0 %vm872_vm0, %v871_v0  ;;  %v700_v3 = vld [vmem:[#allocation7] sm:$0xff]   ;;  %v699_v4 = vld [vmem:[#allocation2] sm:$0xff]   ;;  %vm123_vm1 = vcmask 261120   ;;  %v702_v6 = vld [vmem:[#allocation7 + $0x10] sm:$0xff]   ;;  %s873_s16 = smov [#allocation11]  }
  0x5b   :  { %627 = vmatprep.subr.bf16.mxu1 %v871_v0  ;;  %643 = vmatprep.mubr.msk.bf16.mxu1 %vm872_vm0, %v871_v0  ;;  %v701_v5 = vld [vmem:[#allocation7 + $0x8] sm:$0xff]   ;;  %v703_v7 = vld [vmem:[#allocation7 + $0x18] sm:$0xff]   ;;  %v704_v8 = vld [vmem:[#allocation7 + $0x20] sm:$0xff]   ;;  %s531_s17 = sshll.u32 %s873_s16, 4  ;;  %s532_s17 = int_to_ptr.vmem [resolvable:$true] %s531_s17 }
  0x5c   :  { %620 = vmatpush3.bf16.msra.mxu0 %v697_v1  ;;  %628 = vmatpush3.bf16.msra.mxu1 %v700_v3  ;;  %v705_v9 = vld [vmem:[#allocation7 + $0x28] sm:$0xff]   ;;  %v706_v10 = vld [vmem:[#allocation7 + $0x30] sm:$0xff]   ;;  %v707_v11 = vld [vmem:[#allocation7 + $0x38] sm:$0xff]   ;;  %s834_s18 = scalar_lea.vmem %s532_s17, 128  ;;  %p839_p13 = scmp.lt.s32.totalorder %s532_s17, %s532_s17 }
  0x5d   :  { %621 = vmatprep.subr.bf16.mxu0 %v871_v0  ;;  %629 = vmatprep.subr.bf16.mxu1 %v871_v0  ;;  %v708_v12 = vld [vmem:[#allocation8] sm:$0xff]   ;;  %v709_v13 = vld [vmem:[#allocation8 + $0x8] sm:$0xff]   ;;  %v710_v14 = vld [vmem:[#allocation8 + $0x10] sm:$0xff]   ;;  %p835_p12 = scmp.ne.s32.totalorder %s532_s17, %s834_s18  ;;  %p840_p0 = scmp.lt.s32.totalorder %s834_s18, %s834_s18 }
  0x5e   :  { %v711_v15 = vld [vmem:[#allocation8 + $0x18] sm:$0xff]   ;;  %v712_v16 = vld [vmem:[#allocation8 + $0x20] sm:$0xff]   ;;  %v713_v17 = vld [vmem:[#allocation8 + $0x28] sm:$0xff]  }
  0x5f   :  { %v545_v18 = vld [vmem:[%s1064_s5] ss:$0 sm:$0xff]  ;;  %v714_v28 = vld [vmem:[#allocation8 + $0x30] sm:$0xff]   ;;  %v715_v29 = vld [vmem:[#allocation8 + $0x38] sm:$0xff]   ;;  %p841_p1 = por %p840_p0, %p839_p13 }
  0x60   :  { %622 = vmatpush3.bf16.msra.mxu0 %v698_v2  ;;  %630 = vmatpush3.bf16.msra.mxu1 %v701_v5  ;;  %v716_v30 = vld [vmem:[#allocation10] sm:$0xff]   ;;  %v717_v31 = vld [vmem:[#allocation10 + $0x8] sm:$0xff]   ;;  %v718_v32 = vld [vmem:[#allocation10 + $0x10] sm:$0xff]  }
  0x61   :  { %647 = vmatprep.subr.bf16.mxu0 %v871_v0  ;;  %631 = vmatprep.subr.bf16.mxu1 %v871_v0  ;;  %v719_v33 = vld [vmem:[#allocation10 + $0x18] sm:$0xff]   ;;  %v720_v34 = vld [vmem:[#allocation10 + $0x20] sm:$0xff]   ;;  %v721_v35 = vld [vmem:[#allocation10 + $0x28] sm:$0xff]   ;;  %p842_p2 = pnand %p841_p1, %p835_p12 }
  0x62   :  { %v551_v36 = vld [vmem:[%s1064_s5 + $0x1] ss:$0 sm:$0xff]  ;;  %v722_v46 = vld [vmem:[#allocation10 + $0x30] sm:$0xff]   ;;  %v723_v47 = vld [vmem:[#allocation10 + $0x38] sm:$0xff]  }
  0x63   :  { %624 = vmatmul.mubr.msk.bf16.vlgmr.msra.gmra.mrb[0].mxu0 %vm123_vm1, %v699_v4  ;;  %v561_v48 = vld [vmem:[%s1064_s5 + $0x2] ss:$0 sm:$0xff]  ;;  %v571_v58 = vld [vmem:[%s1064_s5 + $0x3] ss:$0 sm:$0xff] }
  0x64   :  { %663 = vmatprep.mubr.msk.bf16.mxu0 %vm872_vm0, %v871_v0  ;;  %632 = vmatpush3.bf16.msra.mxu1 %v702_v6 }
  0x65   :  { %633 = vmatprep.subr.bf16.mxu1 %v871_v0  ;;  %648 = vmatpush3.bf16.msra.mxu0 %v708_v12 }
  0x66   :  { %649 = vmatprep.subr.bf16.mxu0 %v871_v0 }
  0x68   :  { %634 = vmatpush3.bf16.msra.mxu1 %v703_v7 }
  0x69   :  { %635 = vmatprep.subr.bf16.mxu1 %v871_v0  ;;  %650 = vmatpush3.bf16.msra.mxu0 %v709_v13 }
  0x6a   :  { %651 = vmatprep.subr.bf16.mxu0 %v871_v0 }
  0x6c   :  { %636 = vmatpush3.bf16.msra.mxu1 %v704_v8 }
  0x6d   :  { %637 = vmatprep.subr.bf16.mxu1 %v871_v0  ;;  %652 = vmatpush3.bf16.msra.mxu0 %v710_v14 }
  0x6e   :  { %653 = vmatprep.subr.bf16.mxu0 %v871_v0 }
  0x70   :  { %638 = vmatpush3.bf16.msra.mxu1 %v705_v9 }
  0x71   :  { %639 = vmatprep.subr.bf16.mxu1 %v871_v0  ;;  %654 = vmatpush3.bf16.msra.mxu0 %v711_v15 }
  0x72   :  { %655 = vmatprep.subr.bf16.mxu0 %v871_v0 }
  0x74   :  { %640 = vmatpush3.bf16.msra.mxu1 %v706_v10 }
  0x75   :  { %641 = vmatprep.subr.bf16.mxu1 %v871_v0  ;;  %656 = vmatpush3.bf16.msra.mxu0 %v712_v16 }
  0x76   :  { %657 = vmatprep.subr.bf16.mxu0 %v871_v0 }
  0x78   :  { %642 = vmatpush3.bf16.msra.mxu1 %v707_v11 }
  0x79   :  { %667 = vmatprep.subr.bf16.mxu1 %v871_v0  ;;  %658 = vmatpush3.bf16.msra.mxu0 %v713_v17 }
  0x7a   :  { %659 = vmatprep.subr.bf16.mxu0 %v871_v0 }
  0x7d   :  { %660 = vmatpush3.bf16.msra.mxu0 %v714_v28 }
  0x7e   :  { %661 = vmatprep.subr.bf16.mxu0 %v871_v0 }
  0x81   :  { %662 = vmatpush3.bf16.msra.mxu0 %v715_v29 }
 0x136   :  { %v161_v19 = vpop.f32.mrb[0].mxu0 }
 0x137   :  { %v162_v20 = vadd.f32 %v545_v18, %v161_v19  ;;  %v625_v21 = vpop.f32.mrb[1].mxu0 }
 0x138   :  { %v164_v22 = vpop.f32.mrb[2].mxu0 }
 0x139   :  { %v165_v23 = vadd.f32 %v545_v18, %v164_v22  ;;  %v626_v24 = vpop.f32.mrb[3].mxu0  ;;  %v168_v25 = vmax.f32 %v162_v20, 0.0 }
 0x13b   :  { %v169_v26 = vmax.f32 %v165_v23, 0.0 }
 0x13d   :  { %v170_v27 = vpack.c.bf16 %v169_v26, %v168_v25 }
 0x13f   :  { %644 = vmatmul.mubr.bf16.vlgmr.msra.gmra.mrb[0].mxu1 %v170_v27 }
 0x140   :  { %683 = vmatprep.mubr.msk.bf16.mxu1 %vm872_vm0, %v871_v0  ;;  %668 = vmatpush3.bf16.msra.mxu1 %v716_v30 }
 0x141   :  { %669 = vmatprep.subr.bf16.mxu1 %v871_v0 }
 0x144   :  { %670 = vmatpush3.bf16.msra.mxu1 %v717_v31 }
 0x145   :  { %671 = vmatprep.subr.bf16.mxu1 %v871_v0 }
 0x148   :  { %672 = vmatpush3.bf16.msra.mxu1 %v718_v32 }
 0x149   :  { %673 = vmatprep.subr.bf16.mxu1 %v871_v0 }
 0x14c   :  { %674 = vmatpush3.bf16.msra.mxu1 %v719_v33 }
 0x14d   :  { %675 = vmatprep.subr.bf16.mxu1 %v871_v0 }
 0x150   :  { %676 = vmatpush3.bf16.msra.mxu1 %v720_v34 }
 0x151   :  { %677 = vmatprep.subr.bf16.mxu1 %v871_v0 }
 0x154   :  { %678 = vmatpush3.bf16.msra.mxu1 %v721_v35 }
 0x155   :  { %679 = vmatprep.subr.bf16.mxu1 %v871_v0 }
 0x158   :  { %680 = vmatpush3.bf16.msra.mxu1 %v722_v46 }
 0x159   :  { %681 = vmatprep.subr.bf16.mxu1 %v871_v0 }
 0x15c   :  { %682 = vmatpush3.bf16.msra.mxu1 %v723_v47 }
 0x212   :  { %v277_v37 = vpop.f32.mrb[0].mxu1 }
 0x213   :  { %v278_v38 = vadd.f32 %v551_v36, %v277_v37  ;;  %v645_v39 = vpop.f32.mrb[1].mxu1 }
 0x214   :  { %v280_v40 = vpop.f32.mrb[2].mxu1 }
 0x215   :  { %v281_v41 = vadd.f32 %v551_v36, %v280_v40  ;;  %v646_v42 = vpop.f32.mrb[3].mxu1  ;;  %v284_v43 = vmax.f32 %v278_v38, 0.0 }
 0x217   :  { %v285_v44 = vmax.f32 %v281_v41, 0.0 }
 0x219   :  { %v286_v45 = vpack.c.bf16 %v285_v44, %v284_v43 }
 0x21b   :  { %664 = vmatmul.mubr.bf16.vlgmr.msra.gmra.mrb[4].mxu0 %v286_v45 }
 0x2ee   :  { %v393_v49 = vpop.f32.mrb[4].mxu0 }
 0x2ef   :  { %v394_v50 = vadd.f32 %v561_v48, %v393_v49  ;;  %v665_v51 = vpop.f32.mrb[5].mxu0 }
 0x2f0   :  { %v396_v52 = vpop.f32.mrb[6].mxu0 }
 0x2f1   :  { %v397_v53 = vadd.f32 %v561_v48, %v396_v52  ;;  %v666_v54 = vpop.f32.mrb[7].mxu0  ;;  %v400_v55 = vmax.f32 %v394_v50, 0.0 }
 0x2f3   :  { %v401_v56 = vmax.f32 %v397_v53, 0.0 }
 0x2f5   :  { %v402_v57 = vpack.c.bf16 %v401_v56, %v400_v55 }
 0x2f7   :  { %684 = vmatmul.mubr.bf16.vlgmr.msra.gmra.mrb[4].mxu1 %v402_v57 }
 0x3ca   :  { %v509_v59 = vpop.f32.mrb[4].mxu1 }
 0x3cb   :  { %v685_v60 = vpop.f32.mrb[5].mxu1  ;;  %v510_v62 = vadd.f32 %v571_v58, %v509_v59 }
 0x3cc   :  { %v512_v61 = vpop.f32.mrb[6].mxu1 }
 0x3cd   :  { %v513_v63 = vadd.f32 %v571_v58, %v512_v61  ;;  %v686_v0 = vpop.f32.mrb[7].mxu1 }
 0x3cf   :  { %v587_v1 = vpack.c.bf16 %v513_v63, %v510_v62 }
 0x3d1   :  { %588 = vst [vmem:[#allocation11] sm:$0xff] %v587_v1  }
 0x3d2   :  { %845 = shalt.err (!%p842_p2)
}
 0x3d3   :  { %s846_s20 = scalar_lea.hbm %s1065_s6, 128 }
 0x3d4   :  { %p847_p3 = scmp.ne.s32.totalorder %s1065_s6, %s846_s20  ;;  %p850_p4 = scmp.lt.u32.totalorder %s846_s20, %s1065_s6 }
 0x3d6   :  { %p852_p5 = pnand %p850_p4, %p847_p3 }
 0x3d8   :  { %855 = shalt.err (!%p852_p5)
}
 0x3d9   :  { %537 = dma.vmem_to_hbm [thread:$0]  %s532_s17, 128, %s1065_s6, [#allocation4], %s866_s9, %s866_s9, %s867_s10  }
 0x3da   :  { %862 = dma.done.wait [#allocation4], 128  }
 0x3db   :  { %863 = vsyncadd [#allocation4], 4294967168 }
 0x3dc   :  { %541 = vsyncpa [#allocation3], 1 }
 0x3dd   :  { %542 = vsyncpa [#allocation6], 1 }
 0x3de   :  { %543 = vsyncpa [#allocation9], 1 }
 0x3df   :  { %544 = vsyncpa [#allocation4], 1 }

</bundles_post_ra>
